<compile_context>
chip_gen: v5e
topology: v5e:2x2
jax: 0.10.0
libtpu: 0.0.40
codegen_flags: <defaults>
</compile_context>

<pallas_src>
import jax
import jax.numpy as jnp
from jax.experimental import pallas as pl
from jax.experimental.pallas import tpu as pltpu


_VMEM_LIMIT = 32 * 1024 * 1024   # safe on v5e (128 MiB) / v6e (128 MiB) / v7x (64 MiB)


# ----------------------------- Pallas kernel -----------------------------

def _fused_forward_kernel(frames_ref, w_frame_ref, b_frame_ref,
                          w_hid_ref, b_hid_ref, w_emb_ref, b_emb_ref,
                          w_fc_ref, b_fc_ref, logit_ref, emb_ref):
    """Whole forward for a block of BT clips, fully fused in VMEM.

    frames_ref : (BT*T, W) bf16   one block of BT clips, frames flattened along rows
    w_*_ref    : (128, 128) bf16  resident across grid steps
    b_*_ref    : (1, 128)  f32
    logit_ref  : (BT, Np)  f32    Np = n_class padded to 128 lanes
    emb_ref    : (BT, E)   f32    post-ReLU embedding (what fc consumes)
    """
    bt, _ = logit_ref.shape
    t = frames_ref.shape[0] // bt
    h_dim = w_frame_ref.shape[1]

    # frame projection -> ReLU  (one tall MXU matmul over all BT*T frames)
    x = frames_ref[...]                                                   # (BT*T, W) bf16
    h = jnp.dot(x, w_frame_ref[...], preferred_element_type=jnp.float32)
    h = jnp.maximum(h + b_frame_ref[...], 0.0)                            # (BT*T, H) f32

    # hidden projection -> ReLU
    h = jnp.dot(h.astype(jnp.bfloat16), w_hid_ref[...],
                preferred_element_type=jnp.float32)
    h = jnp.maximum(h + b_hid_ref[...], 0.0)                              # (BT*T, H) f32

    # PANNs-style temporal pooling per clip (XLU reduce, overlaps MXU work)
    h = h.reshape(bt, t, h_dim)
    pooled = jnp.mean(h, axis=1) + jnp.max(h, axis=1)                     # (BT, H) f32

    # embedding projection -> ReLU
    e = jnp.dot(pooled.astype(jnp.bfloat16), w_emb_ref[...],
                preferred_element_type=jnp.float32)
    e = jnp.maximum(e + b_emb_ref[...], 0.0)                              # (BT, E) f32
    emb_ref[...] = e.astype(emb_ref.dtype)

    # classifier head (lane-dense padded output)
    y = jnp.dot(e.astype(jnp.bfloat16), w_fc_ref[...],
                preferred_element_type=jnp.float32) + b_fc_ref[...]       # (BT, Np) f32
    logit_ref[...] = y.astype(logit_ref.dtype)


# ----------------------------- wrapper -----------------------------

def fused_forward(frames, w_frame, b_frame, w_hid, b_hid,
                  w_emb, b_emb, w_fc_pad, b_fc_pad, *, bt, t):
    """frames (Bp*T, W) bf16 -> (logits (Bp, Np) f32, embedding (Bp, E) f32), one kernel."""
    rows, w = frames.shape
    bp = rows // t
    h = w_frame.shape[1]
    e = w_emb.shape[1]
    np_ = w_fc_pad.shape[1]

    logits, emb = pl.pallas_call(
        _fused_forward_kernel,
        out_shape=(jax.ShapeDtypeStruct((bp, np_), jnp.float32),
                   jax.ShapeDtypeStruct((bp, e), jnp.float32)),
        grid=(bp // bt,),
        in_specs=[
            pl.BlockSpec((bt * t, w), lambda b: (b, 0)),   # BT clips' frames per step
            pl.BlockSpec((w, h), lambda b: (0, 0)),        # weights resident in VMEM
            pl.BlockSpec((1, h), lambda b: (0, 0)),
            pl.BlockSpec((h, h), lambda b: (0, 0)),
            pl.BlockSpec((1, h), lambda b: (0, 0)),
            pl.BlockSpec((h, e), lambda b: (0, 0)),
            pl.BlockSpec((1, e), lambda b: (0, 0)),
            pl.BlockSpec((e, np_), lambda b: (0, 0)),
            pl.BlockSpec((1, np_), lambda b: (0, 0)),
        ],
        out_specs=(
            pl.BlockSpec((bt, np_), lambda b: (b, 0)),
            pl.BlockSpec((bt, e), lambda b: (b, 0)),
        ),
        compiler_params=pltpu.CompilerParams(
            dimension_semantics=("parallel",),             # shard clip-blocks over v7x's 2 TCs
            vmem_limit_bytes=_VMEM_LIMIT),
    )(frames, w_frame, b_frame, w_hid, b_hid, w_emb, b_emb, w_fc_pad, b_fc_pad)
    return logits, emb


# ----------------------------- model -----------------------------

class AudioTrainModelPallas:
    """JAX/Pallas re-implementation of AudioTrainModel.forward.

    forward(data (B, D) waveform, targets (B,)) -> {'logit': (B, n_class), 'target': (B,)}
    """

    def __init__(self, frame_len=128, hidden=128, embed_dim=128, n_class=50, seed=0,
                 max_clips_per_step=64):
        self.frame_len = frame_len
        self.hidden = hidden
        self.embed_dim = embed_dim
        self.n_class = n_class
        self.n_class_pad = ((n_class + 127) // 128) * 128   # lane-dense classifier output
        self.max_clips_per_step = max_clips_per_step

        k = jax.random.PRNGKey(seed)
        k1, k2, k3, k4 = jax.random.split(k, 4)
        s = lambda fan_in: 1.0 / jnp.sqrt(jnp.float32(fan_in))

        # encoder: frame projection -> hidden -> (pool) -> embedding.  Matmul operands bf16.
        self.w_frame = (jax.random.normal(k1, (frame_len, hidden), jnp.float32)
                        * s(frame_len)).astype(jnp.bfloat16)
        self.b_frame = jnp.zeros((1, hidden), jnp.float32)
        self.w_hid = (jax.random.normal(k2, (hidden, hidden), jnp.float32)
                      * s(hidden)).astype(jnp.bfloat16)
        self.b_hid = jnp.zeros((1, hidden), jnp.float32)
        self.w_emb = (jax.random.normal(k3, (hidden, embed_dim), jnp.float32)
                      * s(hidden)).astype(jnp.bfloat16)
        self.b_emb = jnp.zeros((1, embed_dim), jnp.float32)

        # classifier head: nn.Linear(audio_embed_dim, n_class), columns padded to 128 lanes.
        w_fc = jax.random.normal(k4, (embed_dim, n_class), jnp.float32) * s(embed_dim)
        self.w_fc = jnp.pad(
            w_fc, ((0, 0), (0, self.n_class_pad - n_class))).astype(jnp.bfloat16)
        self.b_fc = jnp.zeros((1, self.n_class_pad), jnp.float32)

    def _run(self, waveform):
        B, D = waveform.shape
        W = self.frame_len
        T = D // W
        # clips-per-step: multiple of 8 sublanes, capped so BT*T rows stay small in VMEM.
        BT = min(self.max_clips_per_step, ((B + 7) // 8) * 8)
        Bp = ((B + BT - 1) // BT) * BT
        # glue (plain JAX): framing + bf16 cast + batch pad; tail samples beyond T*W dropped.
        frames = waveform[:, : T * W].reshape(B * T, W)
        if Bp != B:
            frames = jnp.pad(frames, ((0, (Bp - B) * T), (0, 0)))
        frames = frames.astype(jnp.bfloat16)
        logits, emb = fused_forward(frames, self.w_frame, self.b_frame,
                                    self.w_hid, self.b_hid, self.w_emb, self.b_emb,
                                    self.w_fc, self.b_fc, bt=BT, t=T)
        return logits[:B, : self.n_class], emb[:B]

    def encode_audio(self, waveform):
        """Waveform -> clip embedding (stand-in for audio_encoder(...)['embedding'])."""
        _, emb = self._run(waveform)
        return emb

    def forward(self, data, targets):
        logits, _ = self._run(data)                                       # (B, n_class)
        return {"logit": logits, "target": targets}


# ----------------------------- main -----------------------------

if __name__ == "__main__":
    B, D = 2, 2048          # small synthetic waveform: 2 clips of 2048 samples
    n_class = 50

    key = jax.random.PRNGKey(0)
    kd, kt = jax.random.split(key)
    data = jax.random.normal(kd, (B, D), jnp.float32)
    targets = jax.random.randint(kt, (B,), 0, n_class, jnp.int32)

    model = AudioTrainModelPallas(frame_len=128, hidden=128, embed_dim=128,
                                  n_class=n_class, seed=0)

    out = model.forward(data, targets)
    jax.block_until_ready(out["logit"])
    jax.block_until_ready(out["target"])

    emb = model.encode_audio(data)
    jax.block_until_ready(emb)

    assert out["logit"].shape == (B, n_class)
    assert out["target"].shape == (B,)
    assert emb.shape == (B, 128)
    assert bool(jnp.all(jnp.isfinite(out["logit"])))
    assert bool(jnp.all(jnp.isfinite(emb)))
    print("KERNEL_OK")
</pallas_src>

<mosaic_0001>
module attributes {stable_mosaic.version = 11 : i64} {
  func.func @_fused_forward_kernel(%arg0: i32, %arg1: memref<128x128xbf16, #tpu.memory_space<vmem>>, %arg2: memref<128x128xbf16, #tpu.memory_space<vmem>>, %arg3: memref<1x128xf32, #tpu.memory_space<vmem>>, %arg4: memref<128x128xbf16, #tpu.memory_space<vmem>>, %arg5: memref<1x128xf32, #tpu.memory_space<vmem>>, %arg6: memref<128x128xbf16, #tpu.memory_space<vmem>>, %arg7: memref<1x128xf32, #tpu.memory_space<vmem>>, %arg8: memref<128x128xbf16, #tpu.memory_space<vmem>>, %arg9: memref<1x128xf32, #tpu.memory_space<vmem>>, %arg10: memref<8x128xf32, #tpu.memory_space<vmem>>, %arg11: memref<8x128xf32, #tpu.memory_space<vmem>>) attributes {dimension_semantics = [#tpu.dimension_semantics<parallel>], iteration_bounds = array<i64: 1>, scalar_prefetch = 0 : i64, scratch_operands = 0 : i64, tpu.core_type = #tpu.core_type<tc>, window_params = [{transform_indices = @transform_0, window_bounds = array<i64: 128, 128>}, {pipeline_mode = #tpu.pipeline_mode<synchronous>, transform_indices = @transform_1, window_bounds = array<i64: 128, 128>}, {pipeline_mode = #tpu.pipeline_mode<synchronous>, transform_indices = @transform_2, window_bounds = array<i64: 1, 128>}, {pipeline_mode = #tpu.pipeline_mode<synchronous>, transform_indices = @transform_3, window_bounds = array<i64: 128, 128>}, {pipeline_mode = #tpu.pipeline_mode<synchronous>, transform_indices = @transform_4, window_bounds = array<i64: 1, 128>}, {pipeline_mode = #tpu.pipeline_mode<synchronous>, transform_indices = @transform_5, window_bounds = array<i64: 128, 128>}, {pipeline_mode = #tpu.pipeline_mode<synchronous>, transform_indices = @transform_6, window_bounds = array<i64: 1, 128>}, {pipeline_mode = #tpu.pipeline_mode<synchronous>, transform_indices = @transform_7, window_bounds = array<i64: 128, 128>}, {pipeline_mode = #tpu.pipeline_mode<synchronous>, transform_indices = @transform_8, window_bounds = array<i64: 1, 128>}, {transform_indices = @transform_9, window_bounds = array<i64: 8, 128>}, {transform_indices = @transform_10, window_bounds = array<i64: 8, 128>}]} {
    %c0 = arith.constant 0 : index
    %c0_0 = arith.constant 0 : index
    %0 = vector.load %arg1[%c0, %c0_0] : memref<128x128xbf16, #tpu.memory_space<vmem>>, vector<128x128xbf16>
    %c0_1 = arith.constant 0 : index
    %c0_2 = arith.constant 0 : index
    %1 = vector.load %arg2[%c0_1, %c0_2] : memref<128x128xbf16, #tpu.memory_space<vmem>>, vector<128x128xbf16>
    %cst = arith.constant dense<0.000000e+00> : vector<128x128xf32>
    %2 = tpu.matmul %0, %1, %cst {dimension_numbers = #tpu.dot_dimension_numbers<[1], [0], [0], [1], [0, 0, 1, 1], [], []>} : vector<128x128xbf16>, vector<128x128xbf16>, vector<128x128xf32> -> vector<128x128xf32>
    %c0_3 = arith.constant 0 : index
    %c0_4 = arith.constant 0 : index
    %3 = vector.load %arg3[%c0_3, %c0_4] : memref<1x128xf32, #tpu.memory_space<vmem>>, vector<1x128xf32>
    %4 = vector.broadcast %3 : vector<1x128xf32> to vector<128x128xf32>
    %5 = arith.addf %2, %4 : vector<128x128xf32>
    %cst_5 = arith.constant 0.000000e+00 : f32
    %6 = vector.broadcast %cst_5 : f32 to vector<128x128xf32>
    %7 = arith.maximumf %5, %6 : vector<128x128xf32>
    %8 = arith.truncf %7 : vector<128x128xf32> to vector<128x128xbf16>
    %c0_6 = arith.constant 0 : index
    %c0_7 = arith.constant 0 : index
    %9 = vector.load %arg4[%c0_6, %c0_7] : memref<128x128xbf16, #tpu.memory_space<vmem>>, vector<128x128xbf16>
    %cst_8 = arith.constant dense<0.000000e+00> : vector<128x128xf32>
    %10 = tpu.matmul %8, %9, %cst_8 {dimension_numbers = #tpu.dot_dimension_numbers<[1], [0], [0], [1], [0, 0, 1, 1], [], []>} : vector<128x128xbf16>, vector<128x128xbf16>, vector<128x128xf32> -> vector<128x128xf32>
    %c0_9 = arith.constant 0 : index
    %c0_10 = arith.constant 0 : index
    %11 = vector.load %arg5[%c0_9, %c0_10] : memref<1x128xf32, #tpu.memory_space<vmem>>, vector<1x128xf32>
    %12 = vector.broadcast %11 : vector<1x128xf32> to vector<128x128xf32>
    %13 = arith.addf %10, %12 : vector<128x128xf32>
    %cst_11 = arith.constant 0.000000e+00 : f32
    %14 = vector.broadcast %cst_11 : f32 to vector<128x128xf32>
    %15 = arith.maximumf %13, %14 : vector<128x128xf32>
    %16 = vector.shape_cast %15 : vector<128x128xf32> to vector<8x16x128xf32>
    %cst_12 = arith.constant dense<0.000000e+00> : vector<8x128xf32>
    %17 = vector.multi_reduction <add>, %16, %cst_12 [1] : vector<8x16x128xf32> to vector<8x128xf32>
    %cst_13 = arith.constant 1.600000e+01 : f32
    %18 = vector.broadcast %cst_13 : f32 to vector<8x128xf32>
    %19 = arith.divf %17, %18 : vector<8x128xf32>
    %cst_14 = arith.constant dense<0xFF800000> : vector<8x128xf32>
    %20 = vector.multi_reduction <maximumf>, %16, %cst_14 [1] : vector<8x16x128xf32> to vector<8x128xf32>
    %21 = arith.addf %19, %20 : vector<8x128xf32>
    %22 = arith.truncf %21 : vector<8x128xf32> to vector<8x128xbf16>
    %c0_15 = arith.constant 0 : index
    %c0_16 = arith.constant 0 : index
    %23 = vector.load %arg6[%c0_15, %c0_16] : memref<128x128xbf16, #tpu.memory_space<vmem>>, vector<128x128xbf16>
    %cst_17 = arith.constant dense<0.000000e+00> : vector<8x128xf32>
    %24 = tpu.matmul %22, %23, %cst_17 {dimension_numbers = #tpu.dot_dimension_numbers<[1], [0], [0], [1], [0, 0, 1, 1], [], []>} : vector<8x128xbf16>, vector<128x128xbf16>, vector<8x128xf32> -> vector<8x128xf32>
    %c0_18 = arith.constant 0 : index
    %c0_19 = arith.constant 0 : index
    %25 = vector.load %arg7[%c0_18, %c0_19] : memref<1x128xf32, #tpu.memory_space<vmem>>, vector<1x128xf32>
    %26 = vector.broadcast %25 : vector<1x128xf32> to vector<8x128xf32>
    %27 = arith.addf %24, %26 : vector<8x128xf32>
    %cst_20 = arith.constant 0.000000e+00 : f32
    %28 = vector.broadcast %cst_20 : f32 to vector<8x128xf32>
    %29 = arith.maximumf %27, %28 : vector<8x128xf32>
    %c0_21 = arith.constant 0 : index
    %c0_22 = arith.constant 0 : index
    %30 = vector.load %arg11[%c0_21, %c0_22] : memref<8x128xf32, #tpu.memory_space<vmem>>, vector<8x128xf32>
    tpu.vector_store %arg11[%c0_21, %c0_22], %29 {strides = array<i32>} : memref<8x128xf32, #tpu.memory_space<vmem>>, vector<8x128xf32>,
    %31 = arith.truncf %29 : vector<8x128xf32> to vector<8x128xbf16>
    %c0_23 = arith.constant 0 : index
    %c0_24 = arith.constant 0 : index
    %32 = vector.load %arg8[%c0_23, %c0_24] : memref<128x128xbf16, #tpu.memory_space<vmem>>, vector<128x128xbf16>
    %cst_25 = arith.constant dense<0.000000e+00> : vector<8x128xf32>
    %33 = tpu.matmul %31, %32, %cst_25 {dimension_numbers = #tpu.dot_dimension_numbers<[1], [0], [0], [1], [0, 0, 1, 1], [], []>} : vector<8x128xbf16>, vector<128x128xbf16>, vector<8x128xf32> -> vector<8x128xf32>
    %c0_26 = arith.constant 0 : index
    %c0_27 = arith.constant 0 : index
    %34 = vector.load %arg9[%c0_26, %c0_27] : memref<1x128xf32, #tpu.memory_space<vmem>>, vector<1x128xf32>
    %35 = vector.broadcast %34 : vector<1x128xf32> to vector<8x128xf32>
    %36 = arith.addf %33, %35 : vector<8x128xf32>
    %c0_28 = arith.constant 0 : index
    %c0_29 = arith.constant 0 : index
    %37 = vector.load %arg10[%c0_28, %c0_29] : memref<8x128xf32, #tpu.memory_space<vmem>>, vector<8x128xf32>
    tpu.vector_store %arg10[%c0_28, %c0_29], %36 {strides = array<i32>} : memref<8x128xf32, #tpu.memory_space<vmem>>, vector<8x128xf32>,
    return
  }
  func.func @transform_0(%arg0: i32) -> (i32, i32) {
    %c0_i32 = arith.constant 0 : i32
    %c0_i32_0 = arith.constant 0 : i32
    return %arg0, %c0_i32 : i32, i32
  }
  func.func @transform_1(%arg0: i32) -> (i32, i32) {
    %c0_i32 = arith.constant 0 : i32
    %c0_i32_0 = arith.constant 0 : i32
    %c0_i32_1 = arith.constant 0 : i32
    return %c0_i32, %c0_i32_0 : i32, i32
  }
  func.func @transform_2(%arg0: i32) -> (i32, i32) {
    %c0_i32 = arith.constant 0 : i32
    %c0_i32_0 = arith.constant 0 : i32
    %c0_i32_1 = arith.constant 0 : i32
    return %c0_i32, %c0_i32_0 : i32, i32
  }
  func.func @transform_3(%arg0: i32) -> (i32, i32) {
    %c0_i32 = arith.constant 0 : i32
    %c0_i32_0 = arith.constant 0 : i32
    %c0_i32_1 = arith.constant 0 : i32
    return %c0_i32, %c0_i32_0 : i32, i32
  }
  func.func @transform_4(%arg0: i32) -> (i32, i32) {
    %c0_i32 = arith.constant 0 : i32
    %c0_i32_0 = arith.constant 0 : i32
    %c0_i32_1 = arith.constant 0 : i32
    return %c0_i32, %c0_i32_0 : i32, i32
  }
  func.func @transform_5(%arg0: i32) -> (i32, i32) {
    %c0_i32 = arith.constant 0 : i32
    %c0_i32_0 = arith.constant 0 : i32
    %c0_i32_1 = arith.constant 0 : i32
    return %c0_i32, %c0_i32_0 : i32, i32
  }
  func.func @transform_6(%arg0: i32) -> (i32, i32) {
    %c0_i32 = arith.constant 0 : i32
    %c0_i32_0 = arith.constant 0 : i32
    %c0_i32_1 = arith.constant 0 : i32
    return %c0_i32, %c0_i32_0 : i32, i32
  }
  func.func @transform_7(%arg0: i32) -> (i32, i32) {
    %c0_i32 = arith.constant 0 : i32
    %c0_i32_0 = arith.constant 0 : i32
    %c0_i32_1 = arith.constant 0 : i32
    return %c0_i32, %c0_i32_0 : i32, i32
  }
  func.func @transform_8(%arg0: i32) -> (i32, i32) {
    %c0_i32 = arith.constant 0 : i32
    %c0_i32_0 = arith.constant 0 : i32
    %c0_i32_1 = arith.constant 0 : i32
    return %c0_i32, %c0_i32_0 : i32, i32
  }
  func.func @transform_9(%arg0: i32) -> (i32, i32) {
    %c0_i32 = arith.constant 0 : i32
    %c0_i32_0 = arith.constant 0 : i32
    return %arg0, %c0_i32 : i32, i32
  }
  func.func @transform_10(%arg0: i32) -> (i32, i32) {
    %c0_i32 = arith.constant 0 : i32
    %c0_i32_0 = arith.constant 0 : i32
    return %arg0, %c0_i32 : i32, i32
  }
}

</mosaic_0001>

<bundles_post_ra>
// kernel: tpu_custom_call.1
= control target key start
LH: loop header
LB: loop body
LE: loop exit
PB: predicated region body
PF: predicated region fallthrough
CT: control target
= control target key end

     0   :  { %16 = vsyncpa [#allocation3], 0  ;;  %s1376_s0 = inlined_call_operand.hbm [shape: bf16[128,128], index: 0, kind: input, shape index: {}]   ;;  %s1377_s1 = inlined_call_operand.hbm [shape: bf16[128,128], index: 1, kind: input, shape index: {}]   ;;  %s1378_s2 = inlined_call_operand.vmem [shape: f32[1,128], index: 2, kind: input, shape index: {}]   ;;  %s1379_s3 = inlined_call_operand.hbm [shape: bf16[128,128], index: 3, kind: input, shape index: {}]   ;;  %s1380_s4 = inlined_call_operand.vmem [shape: f32[1,128], index: 4, kind: input, shape index: {}]   ;;  %s1381_s5 = inlined_call_operand.hbm [shape: bf16[128,128], index: 5, kind: input, shape index: {}]   ;;  %s1382_s6 = inlined_call_operand.vmem [shape: f32[1,128], index: 6, kind: input, shape index: {}]   ;;  %s1383_s7 = inlined_call_operand.hbm [shape: bf16[128,128], index: 7, kind: input, shape index: {}]   ;;  %s1384_s8 = inlined_call_operand.vmem [shape: f32[1,128], index: 8, kind: input, shape index: {}]   ;;  %s1385_s9 = inlined_call_operand.hbm [shape: f32[8,128], index: 9, kind: output, shape index: {0}]   ;;  %s1386_s10 = inlined_call_operand.hbm [shape: f32[8,128], index: 10, kind: output, shape index: {1}]  }
   0x1   :  { %17 = vsyncpa [#allocation6], 0 }
   0x2   :  { %18 = vsyncpa [#allocation9], 0 }
   0x3   :  { %19 = vsyncpa [#allocation4], 0 }
   0x4   :  { %20 = vsyncpa [#allocation13], 0  ;;  %s38_s15 = sshll.u32 %s1377_s1, 4  ;;  %s1238_s16 = smov [#allocation5]   ;;  %s39_s15 = int_to_ptr.hbm [resolvable:$true] %s38_s15 }
   0x5   :  { %s40_s17 = sshll.u32 %s1238_s16, 4  ;;  %s68_s20 = sshll.u32 %s1381_s5, 4  ;;  %s41_s17 = int_to_ptr.vmem [resolvable:$true] %s40_s17  ;;  %s69_s20 = int_to_ptr.hbm [resolvable:$true] %s68_s20 }
   0x6   :  { %s1239_s21 = smov 64   ;;  %s1240_s22 = smov 4  }
   0x7   :  { %46 = dma.hbm_to_vmem [thread:$0]  %s39_s15, 1024, %s41_s17, [#allocation6], %s1239_s21, %s1239_s21, %s1240_s22  }
   0x8   :  { %s1241_s23 = smov [#allocation8]   ;;  %s25_s27 = sshll.u32 %s1376_s0, 4  ;;  %s26_s27 = int_to_ptr.hbm [resolvable:$true] %s25_s27 }
   0x9   :  { %s70_s24 = sshll.u32 %s1241_s23, 4  ;;  %s53_s29 = sshll.u32 %s1379_s3, 4  ;;  %s71_s24 = int_to_ptr.vmem [resolvable:$true] %s70_s24  ;;  %s54_s29 = int_to_ptr.hbm [resolvable:$true] %s53_s29 }
   0xa   :  { %76 = dma.hbm_to_vmem [thread:$0]  %s69_s20, 1024, %s71_s24, [#allocation9], %s1239_s21, %s1239_s21, %s1240_s22  }
   0xb   :  { %s1242_s30 = smov [#allocation2]   ;;  %s1243_s5 = smov [#allocation7]  }
   0xc   :  { %s27_s11 = sshll.u32 %s1242_s30, 4  ;;  %s55_s12 = sshll.u32 %s1243_s5, 4  ;;  %s28_s11 = int_to_ptr.vmem [resolvable:$true] %s27_s11  ;;  %s56_s12 = int_to_ptr.vmem [resolvable:$true] %s55_s12 }
   0xd   :  { %33 = dma.hbm_to_vmem [thread:$0]  %s26_s27, 1024, %s28_s11, [#allocation3], %s1239_s21, %s1239_s21, %s1240_s22  }
   0xe   :  { %s83_s15 = sshll.u32 %s1383_s7, 4  ;;  %s1244_s0 = smov [#allocation10]   ;;  %s84_s15 = int_to_ptr.hbm [resolvable:$true] %s83_s15 }
   0xf   :  { %61 = dma.hbm_to_vmem [thread:$0]  %s54_s29, 1024, %s56_s12, [#allocation6], %s1239_s21, %s1239_s21, %s1240_s22  }
  0x10   :  { %s85_s16 = sshll.u32 %s1244_s0, 4  ;;  %s86_s16 = int_to_ptr.vmem [resolvable:$true] %s85_s16 }
  0x11   :  { %91 = dma.hbm_to_vmem [thread:$0]  %s84_s15, 1024, %s86_s16, [#allocation9], %s1239_s21, %s1239_s21, %s1240_s22  }
  0x12   :  { %1228 = dma.done.wait [#allocation3], 1024  }
  0x13   :  { %1229 = vsyncadd [#allocation3], 4294966272 }
  0x14   :  { %1230 = dma.done.wait [#allocation6], 2048  }
  0x15   :  { %1231 = vsyncadd [#allocation6], 4294965248 }
  0x16   :  { %1232 = dma.done.wait [#allocation9], 2048  }
  0x17   :  { %1233 = vsyncadd [#allocation9], 4294965248  ;;  %v1003_v0 = vld [vmem:[#allocation5 + $0x38] sm:$0xff]  ;;  %v1002_v1 = vld [vmem:[#allocation5 + $0x30] sm:$0xff]  ;;  %vm631_vm1 = vcmask 1041409   ;;  %vm633_vm2 = vcmask 1042434  }
  0x18   :  { %246 = vmatpush.bf16.msra.mxu0 %v1003_v0  ;;  %1028 = vmatpush.bf16.msra.mxu2 %v1003_v0  ;;  %v1001_v2 = vld [vmem:[#allocation5 + $0x28] sm:$0xff]  ;;  %v1000_v3 = vld [vmem:[#allocation5 + $0x20] sm:$0xff]  ;;  %v999_v4 = vld [vmem:[#allocation5 + $0x18] sm:$0xff]  ;;  %vm635_vm3 = vcmask 1043459   ;;  %vm637_vm4 = vcmask 1044484   ;;  %vm639_vm5 = vcmask 1045509  }
  0x19   :  { %v998_v5 = vld [vmem:[#allocation5 + $0x10] sm:$0xff]  ;;  %v997_v6 = vld [vmem:[#allocation5 + $0x8] sm:$0xff]  ;;  %v996_v7 = vld [vmem:[#allocation5] sm:$0xff]  ;;  %vm641_vm6 = vcmask 1046534   ;;  %vm643_vm7 = vcmask 1047559   ;;  %s1246_s19 = smov [#allocation12]  }
  0x1a   :  { %v988_v8 = vld [vmem:[#allocation2] sm:$0xff]  ;;  %v993_v9 = vld [vmem:[#allocation2 + $0x28] sm:$0xff]  ;;  %v994_v11 = vld [vmem:[#allocation2 + $0x30] sm:$0xff]  ;;  %s809_s20 = sshll.u32 %s1246_s19, 4  ;;  %s811_s23 = sshll.u32 %s1386_s10, 4  ;;  %s810_s20 = int_to_ptr.vmem [resolvable:$true] %s809_s20  ;;  %s812_s23 = int_to_ptr.hbm [resolvable:$true] %s811_s23 }
  0x1b   :  { %v989_v10 = vld [vmem:[#allocation2 + $0x8] sm:$0xff]  ;;  %v990_v12 = vld [vmem:[#allocation2 + $0x10] sm:$0xff]  ;;  %v995_v13 = vld [vmem:[#allocation2 + $0x38] sm:$0xff]  ;;  %s800_s28 = sshll.u32 %s1385_s9, 4  ;;  %s801_s28 = int_to_ptr.hbm [resolvable:$true] %s800_s28 }
  0x1c   :  { %247 = vmatpush.bf16.msra.mxu0 %v1002_v1  ;;  %1029 = vmatpush.bf16.msra.mxu2 %v1002_v1  ;;  %v1011_v14 = vld [vmem:[#allocation7 + $0x38] sm:$0xff]  ;;  %v1010_v15 = vld [vmem:[#allocation7 + $0x30] sm:$0xff]  ;;  %v1009_v16 = vld [vmem:[#allocation7 + $0x28] sm:$0xff] }
  0x1d   :  { %387 = vmatpush.bf16.msra.mxu1 %v1011_v14  ;;  %1036 = vmatpush.bf16.msra.mxu3 %v1011_v14  ;;  %v1008_v17 = vld [vmem:[#allocation7 + $0x20] sm:$0xff]  ;;  %v991_v18 = vld [vmem:[#allocation2 + $0x18] sm:$0xff]  ;;  %v1006_v21 = vld [vmem:[#allocation7 + $0x10] sm:$0xff] }
  0x1e   :  { %v992_v19 = vld [vmem:[#allocation2 + $0x20] sm:$0xff]  ;;  %v1007_v20 = vld [vmem:[#allocation7 + $0x18] sm:$0xff]  ;;  %v1005_v22 = vld [vmem:[#allocation7 + $0x8] sm:$0xff] }
  0x1f   :  { %v1004_v23 = vld [vmem:[#allocation7] sm:$0xff] }
  0x20   :  { %248 = vmatpush.bf16.msra.mxu0 %v1001_v2  ;;  %1030 = vmatpush.bf16.msra.mxu2 %v1001_v2  ;;  %v1054_v25 = vld [vmem:[%s1378_s2] ss:$0 sm:$0xff] }
  0x21   :  { %388 = vmatpush.bf16.msra.mxu1 %v1010_v15  ;;  %1037 = vmatpush.bf16.msra.mxu3 %v1010_v15 }
  0x24   :  { %249 = vmatpush.bf16.msra.mxu0 %v1000_v3  ;;  %1031 = vmatpush.bf16.msra.mxu2 %v1000_v3 }
  0x25   :  { %389 = vmatpush.bf16.msra.mxu1 %v1009_v16  ;;  %1038 = vmatpush.bf16.msra.mxu3 %v1009_v16 }
  0x28   :  { %250 = vmatpush.bf16.msra.mxu0 %v999_v4  ;;  %1032 = vmatpush.bf16.msra.mxu2 %v999_v4 }
  0x29   :  { %390 = vmatpush.bf16.msra.mxu1 %v1008_v17  ;;  %1039 = vmatpush.bf16.msra.mxu3 %v1008_v17 }
  0x2c   :  { %251 = vmatpush.bf16.msra.mxu0 %v998_v5  ;;  %1033 = vmatpush.bf16.msra.mxu2 %v998_v5 }
  0x2d   :  { %391 = vmatpush.bf16.msra.mxu1 %v1007_v20  ;;  %1040 = vmatpush.bf16.msra.mxu3 %v1007_v20 }
  0x30   :  { %252 = vmatpush.bf16.msra.mxu0 %v997_v6  ;;  %1034 = vmatpush.bf16.msra.mxu2 %v997_v6 }
  0x31   :  { %392 = vmatpush.bf16.msra.mxu1 %v1006_v21  ;;  %1041 = vmatpush.bf16.msra.mxu3 %v1006_v21 }
  0x34   :  { %253 = vmatpush.bf16.msra.mxu0 %v996_v7  ;;  %1035 = vmatpush.bf16.msra.mxu2 %v996_v7 }
  0x35   :  { %393 = vmatpush.bf16.msra.mxu1 %v1005_v22  ;;  %1042 = vmatpush.bf16.msra.mxu3 %v1005_v22 }
  0x37   :  { %254 = vmatmul.bf16.vlgmr.msra.gmra.mxu0 %v988_v8  ;;  %279 = vmatmul.bf16.vlgmr.msra.gmra.mxu2 %v993_v9 }
  0x39   :  { %394 = vmatpush.bf16.msra.mxu1 %v1004_v23  ;;  %1043 = vmatpush.bf16.msra.mxu3 %v1004_v23 }
  0x47   :  { %259 = vmatmul.bf16.gmra.mxu0 %v989_v10  ;;  %284 = vmatmul.bf16.gmra.mxu2 %v994_v11 }
  0x57   :  { %264 = vmatmul.bf16.gmra.mxu0 %v990_v12  ;;  %289 = vmatmul.bf16.gmra.mxu2 %v995_v13 }
  0x67   :  { %269 = vmatmul.bf16.gmra.mxu0 %v991_v18 }
  0x77   :  { %274 = vmatmul.bf16.gmra.mxu0 %v992_v19 }
  0xb4   :  { %v255_v24 = vpop.f32.mrf.mxu0 }
  0xb5   :  { %v256_v27 = vadd.f32 %v1054_v25, %v255_v24 }
  0xb7   :  { %v295_v30 = vmax.f32 %v256_v27, 0.0 }
  0xba   :  { %v280_v26 = vpop.f32.mrf.mxu2 }
  0xbb   :  { %v281_v31 = vadd.f32 %v1054_v25, %v280_v26  ;;  %v1324_v26 = vld [vmem:[%s1380_s4] ss:$0 sm:$0xff] }
  0xbc   :  { %v257_v28 = vpop.f32.mrf.mxu0 }
  0xbd   :  { %v258_v29 = vadd.f32 %v1054_v25, %v257_v28  ;;  %v305_v35 = vmax.f32 %v281_v31, 0.0 }
  0xbf   :  { %v296_v32 = vmax.f32 %v258_v29, 0.0  ;;  %v1245_v29 = vmov 16.0  }
  0xc0   :  { %1058 = vrcp.f32 %v1245_v29 }
  0xc1   :  { %v311_v33 = vpack.c.bf16 %v296_v32, %v295_v30  ;;  %v1019_v32 = vld [vmem:[#allocation8 + $0x38] sm:$0xff] }
  0xc2   :  { %v282_v34 = vpop.f32.mrf.mxu2  ;;  %695 = vmatpush.bf16.msrb.mxu2 %v1019_v32 }
  0xc3   :  { %v283_v36 = vadd.f32 %v1054_v25, %v282_v34  ;;  %395 = vmatmul.bf16.vlgmr.msra.gmra.mxu1 %v311_v33 }
  0xc4   :  { %v260_v37 = vpop.f32.mrf.mxu0 }
  0xc5   :  { %v306_v38 = vmax.f32 %v283_v36, 0.0  ;;  %v261_v41 = vadd.f32 %v1054_v25, %v260_v37 }
  0xc6   :  { %v1329_v36 = vpop.eup %1058 }
  0xc7   :  { %v316_v39 = vpack.c.bf16 %v306_v38, %v305_v35  ;;  %v297_v44 = vmax.f32 %v261_v41, 0.0  ;;  %vm513_vm0 = vweird.f32 %v1329_v36 }
  0xc9   :  { %420 = vmatmul.bf16.vlgmr.msra.gmra.mxu3 %v316_v39 }
  0xca   :  { %v285_v40 = vpop.f32.mrf.mxu2 }
  0xcb   :  { %v286_v45 = vadd.f32 %v1054_v25, %v285_v40  ;;  %v1018_v40 = vld [vmem:[#allocation8 + $0x30] sm:$0xff] }
  0xcc   :  { %v262_v42 = vpop.f32.mrf.mxu0  ;;  %696 = vmatpush.bf16.msrb.mxu2 %v1018_v40 }
  0xcd   :  { %v263_v43 = vadd.f32 %v1054_v25, %v262_v42  ;;  %v307_v49 = vmax.f32 %v286_v45, 0.0 }
  0xcf   :  { %v298_v46 = vmax.f32 %v263_v43, 0.0 }
  0xd1   :  { %v312_v47 = vpack.c.bf16 %v298_v46, %v297_v44  ;;  %v509_v44 = vmul.f32 16.0, %v1329_v36 }
  0xd2   :  { %v287_v48 = vpop.f32.mrf.mxu2 }
  0xd3   :  { %v288_v50 = vadd.f32 %v1054_v25, %v287_v48  ;;  %400 = vmatmul.bf16.gmra.mxu1 %v312_v47 }
  0xd4   :  { %v265_v51 = vpop.f32.mrf.mxu0 }
  0xd5   :  { %v308_v52 = vmax.f32 %v288_v50, 0.0  ;;  %v266_v55 = vadd.f32 %v1054_v25, %v265_v51  ;;  %v1017_v51 = vld [vmem:[#allocation8 + $0x28] sm:$0xff] }
  0xd6   :  { %697 = vmatpush.bf16.msrb.mxu2 %v1017_v51 }
  0xd7   :  { %v317_v53 = vpack.c.bf16 %v308_v52, %v307_v49  ;;  %v299_v58 = vmax.f32 %v266_v55, 0.0 }
  0xd9   :  { %425 = vmatmul.bf16.gmra.mxu3 %v317_v53 }
  0xda   :  { %v290_v54 = vpop.f32.mrf.mxu2 }
  0xdb   :  { %v291_v59 = vadd.f32 %v1054_v25, %v290_v54 }
  0xdc   :  { %v267_v56 = vpop.f32.mrf.mxu0 }
  0xdd   :  { %v268_v57 = vadd.f32 %v1054_v25, %v267_v56  ;;  %v309_v63 = vmax.f32 %v291_v59, 0.0 }
  0xdf   :  { %v300_v60 = vmax.f32 %v268_v57, 0.0  ;;  %v510_v57 = vsub.f32 1.0, %v509_v44 }
  0xe1   :  { %v313_v61 = vpack.c.bf16 %v300_v60, %v299_v58 }
  0xe2   :  { %v292_v62 = vpop.f32.mrf.mxu2 }
  0xe3   :  { %v293_v0 = vadd.f32 %v1054_v25, %v292_v62  ;;  %405 = vmatmul.bf16.gmra.mxu1 %v313_v61 }
  0xe4   :  { %v270_v1 = vpop.f32.mrf.mxu0 }
  0xe5   :  { %v310_v2 = vmax.f32 %v293_v0, 0.0  ;;  %v271_v4 = vadd.f32 %v1054_v25, %v270_v1  ;;  %v1016_v1 = vld [vmem:[#allocation8 + $0x20] sm:$0xff] }
  0xe6   :  { %698 = vmatpush.bf16.msrb.mxu2 %v1016_v1 }
  0xe7   :  { %v318_v3 = vpack.c.bf16 %v310_v2, %v309_v63  ;;  %v301_v7 = vmax.f32 %v271_v4, 0.0 }
  0xe9   :  { %430 = vmatmul.bf16.gmra.mxu3 %v318_v3 }
  0xec   :  { %v272_v5 = vpop.f32.mrf.mxu0 }
  0xed   :  { %v273_v6 = vadd.f32 %v1054_v25, %v272_v5 }
  0xef   :  { %v302_v8 = vmax.f32 %v273_v6, 0.0  ;;  %v511_v6 = vmul.f32 %v1329_v36, %v510_v57  ;;  %v1012_v57 = vld [vmem:[#allocation8] sm:$0xff] }
  0xf1   :  { %v314_v9 = vpack.c.bf16 %v302_v8, %v301_v7 }
  0xf3   :  { %410 = vmatmul.bf16.gmra.mxu1 %v314_v9 }
  0xf4   :  { %v275_v10 = vpop.f32.mrf.mxu0 }
  0xf5   :  { %v276_v11 = vadd.f32 %v1054_v25, %v275_v10 }
  0xf7   :  { %v303_v14 = vmax.f32 %v276_v11, 0.0 }
  0xfc   :  { %v277_v12 = vpop.f32.mrf.mxu0 }
  0xfd   :  { %v278_v13 = vadd.f32 %v1054_v25, %v277_v12 }
  0xff   :  { %v304_v15 = vmax.f32 %v278_v13, 0.0 }
 0x101   :  { %v315_v16 = vpack.c.bf16 %v304_v15, %v303_v14  ;;  %v1015_v14 = vld [vmem:[#allocation8 + $0x18] sm:$0xff] }
 0x102   :  { %699 = vmatpush.bf16.msrb.mxu2 %v1015_v14 }
 0x103   :  { %415 = vmatmul.bf16.gmra.mxu1 %v315_v16 }
 0x140   :  { %v396_v17 = vpop.f32.mrf.mxu1 }
 0x141   :  { %v397_v28 = vadd.f32 %v1324_v26, %v396_v17 }
 0x143   :  { %v436_v33 = vmax.f32 %v397_v28, 0.0 }
 0x148   :  { %v398_v18 = vpop.f32.mrf.mxu1 }
 0x149   :  { %v399_v25 = vadd.f32 %v1324_v26, %v398_v18 }
 0x14b   :  { %v437_v31 = vmax.f32 %v399_v25, 0.0 }
 0x14c   :  { %v421_v19 = vpop.f32.mrf.mxu3 }
 0x14d   :  { %v452_v37 = vadd.f32 %v437_v31, %v436_v33  ;;  %v523_v41 = vmax.f32 %v436_v33, %v437_v31  ;;  %v422_v45 = vadd.f32 %v1324_v26, %v421_v19 }
 0x14f   :  { %v453_v47 = vrot.slane %v452_v37, 4  ;;  %v524_v52 = vrot.slane %v523_v41, 4  ;;  %v446_v58 = vmax.f32 %v422_v45, 0.0 }
 0x150   :  { %v401_v20 = vpop.f32.mrf.mxu1 }
 0x151   :  { %v402_v38 = vadd.f32 %v1324_v26, %v401_v20  ;;  %v454_v61 = vadd.f32 %v453_v47, %v452_v37  ;;  %v525_v2 = vmax.f32 %v523_v41, %v524_v52 }
 0x153   :  { %v438_v48 = vmax.f32 %v402_v38, 0.0  ;;  %v455_v11 = vrot.slane %v454_v61, 2  ;;  %v526_v17 = vrot.slane %v525_v2, 2 }
 0x154   :  { %v423_v21 = vpop.f32.mrf.mxu3 }
 0x155   :  { %v424_v49 = vadd.f32 %v1324_v26, %v423_v21  ;;  %v512_v21 = vadd.f32 %v1329_v36, %v511_v6 }
 0x157   :  { %v447_v62 = vmax.f32 %v424_v49, 0.0 }
 0x158   :  { %v403_v22 = vpop.f32.mrf.mxu1 }
 0x159   :  { %v404_v34 = vadd.f32 %v1324_v26, %v403_v22  ;;  %v487_v12 = vadd.f32 %v447_v62, %v446_v58  ;;  %v558_v28 = vmax.f32 %v446_v58, %v447_v62 }
 0x15b   :  { %v439_v42 = vmax.f32 %v404_v34, 0.0  ;;  %v488_v25 = vrot.slane %v487_v12, 4 }
 0x15c   :  { %v426_v23 = vpop.f32.mrf.mxu3 }
 0x15d   :  { %v459_v53 = vadd.f32 %v439_v42, %v438_v48  ;;  %v427_v54 = vadd.f32 %v1324_v26, %v426_v23  ;;  %v530_v15 = vmax.f32 %v438_v48, %v439_v42  ;;  %v1013_v48 = vld [vmem:[#allocation8 + $0x8] sm:$0xff]  ;;  %v489_v49 = vadd.f32 %v488_v25, %v487_v12 }
 0x15f   :  { %v460_v3 = vrot.slane %v459_v53, 4  ;;  %v448_v4 = vmax.f32 %v427_v54, 0.0  ;;  %v531_v31 = vrot.slane %v530_v15, 4 }
 0x160   :  { %v406_v24 = vpop.f32.mrf.mxu1 }
 0x161   :  { %v407_v43 = vadd.f32 %v1324_v26, %v406_v24  ;;  %v461_v18 = vadd.f32 %v460_v3, %v459_v53 }
 0x163   :  { %v440_v55 = vmax.f32 %v407_v43, 0.0  ;;  %v462_v37 = vrot.slane %v461_v18, 2 }
 0x164   :  { %v428_v27 = vpop.f32.mrf.mxu3 }
 0x165   :  { %v429_v56 = vadd.f32 %v1324_v26, %v428_v27  ;;  %v456_v27 = vadd.f32 %v455_v11, %v454_v61  ;;  %v463_v54 = vadd.f32 %v462_v37, %v461_v18  ;;  %v1027_v18 = vld [vmem:[#allocation10 + $0x38] sm:$0xff] }
 0x166   :  { %779 = vmatpush.bf16.msrb.mxu3 %v1027_v18 }
 0x167   :  { %v449_v5 = vmax.f32 %v429_v56, 0.0  ;;  %v457_v45 = vrot.slane %v456_v27, 1 }
 0x168   :  { %v408_v30 = vpop.f32.mrf.mxu1 }
 0x169   :  { %v409_v39 = vadd.f32 %v1324_v26, %v408_v30  ;;  %v494_v19 = vadd.f32 %v449_v5, %v448_v4  ;;  %v1014_v30 = vld [vmem:[#allocation8 + $0x10] sm:$0xff]  ;;  %v565_v32 = vmax.f32 %v448_v4, %v449_v5  ;;  %v458_v62 = vadd.f32 %v457_v45, %v456_v27  ;;  %v1025_v45 = vld [vmem:[#allocation10 + $0x28] sm:$0xff] }
 0x16a   :  { %700 = vmatpush.bf16.msrb.mxu2 %v1014_v30 }
 0x16b   :  { %v441_v50 = vmax.f32 %v409_v39, 0.0  ;;  %v495_v38 = vrot.slane %v494_v19, 4  ;;  %v566_v51 = vrot.slane %v565_v32, 4 }
 0x16c   :  { %v431_v35 = vpop.f32.mrf.mxu3 }
 0x16d   :  { %v432_v59 = vadd.f32 %v1324_v26, %v431_v35  ;;  %v466_v63 = vadd.f32 %v441_v50, %v440_v55  ;;  %v537_v20 = vmax.f32 %v440_v55, %v441_v50  ;;  %v527_v35 = vmax.f32 %v525_v2, %v526_v17 }
 0x16e   :  { %v532_v50 = vmax.f32 %v530_v15, %v531_v31  ;;  %v496_v55 = vadd.f32 %v495_v38, %v494_v19  ;;  %701 = vmatpush.bf16.msrb.mxu2 %v1013_v48  ;;  %v490_v2 = vrot.slane %v489_v49, 2  ;;  %v567_v4 = vmax.f32 %v565_v32, %v566_v51 }
 0x16f   :  { %v450_v7 = vmax.f32 %v432_v59, 0.0  ;;  %v467_v13 = vrot.slane %v466_v63, 4  ;;  %v538_v39 = vrot.slane %v537_v20, 4  ;;  %v528_v53 = vrot.slane %v527_v35, 1 }
 0x170   :  { %v411_v46 = vpop.f32.mrf.mxu1  ;;  %v533_v3 = vrot.slane %v532_v50, 2  ;;  %v491_v19 = vadd.f32 %v490_v2, %v489_v49 }
 0x171   :  { %v412_v8 = vadd.f32 %v1324_v26, %v411_v46  ;;  %v468_v29 = vadd.f32 %v467_v13, %v466_v63  ;;  %v559_v46 = vrot.slane %v558_v28, 4  ;;  %v539_v56 = vmax.f32 %v537_v20, %v538_v39 }
 0x172   :  { %v1349_v63 = vsel %vm513_vm0, %v1329_v36, %v512_v21  ;;  %v1351_v6 = vmax.f32 %v527_v35, %v528_v53  ;;  %702 = vmatpush.bf16.msrb.mxu2 %v1012_v57  ;;  %v534_v20 = vmax.f32 %v532_v50, %v533_v3  ;;  %v568_v21 = vrot.slane %v567_v4, 2 }
 0x173   :  { %v442_v22 = vmax.f32 %v412_v8, 0.0  ;;  %v469_v47 = vrot.slane %v468_v29, 2  ;;  %v540_v8 = vrot.slane %v539_v56, 2  ;;  %v515_v36 = vmul.f32 %v1349_v63, %v458_v62  ;;  %v1024_v62 = vld [vmem:[#allocation10 + $0x20] sm:$0xff] }
 0x174   :  { %v433_v60 = vpop.f32.mrf.mxu3  ;;  %v535_v38 = vrot.slane %v534_v20, 1  ;;  %v569_v39 = vmax.f32 %v567_v4, %v568_v21 }
 0x175   :  { %v434_v0 = vadd.f32 %v1324_v26, %v433_v60  ;;  %v470_v1 = vadd.f32 %v469_v47, %v468_v29 }
 0x177   :  { %v451_v9 = vmax.f32 %v434_v0, 0.0  ;;  %v560_v0 = vmax.f32 %v558_v28, %v559_v46  ;;  %v1026_v28 = vld [vmem:[#allocation10 + $0x30] sm:$0xff] }
 0x178   :  { %v413_v10 = vpop.f32.mrf.mxu1  ;;  %780 = vmatpush.bf16.msrb.mxu3 %v1026_v28 }
 0x179   :  { %v414_v16 = vadd.f32 %v1324_v26, %v413_v10  ;;  %v501_v23 = vadd.f32 %v451_v9, %v450_v7  ;;  %v572_v41 = vmax.f32 %v450_v7, %v451_v9  ;;  %v497_v7 = vrot.slane %v496_v55, 2 }
 0x17a   :  { %v464_v10 = vrot.slane %v463_v54, 1  ;;  %v561_v15 = vrot.slane %v560_v0, 2 }
 0x17b   :  { %v443_v24 = vmax.f32 %v414_v16, 0.0  ;;  %v502_v40 = vrot.slane %v501_v23, 4  ;;  %v573_v59 = vrot.slane %v572_v41, 4  ;;  %v471_v16 = vrot.slane %v470_v1, 1 }
 0x17c   :  { %v465_v29 = vadd.f32 %v464_v10, %v463_v54  ;;  %781 = vmatpush.bf16.msrb.mxu3 %v1025_v45 }
 0x17d   :  { %v473_v33 = vadd.f32 %v443_v24, %v442_v22  ;;  %v544_v34 = vmax.f32 %v442_v22, %v443_v24  ;;  %v503_v58 = vadd.f32 %v502_v40, %v501_v23  ;;  %v574_v12 = vmax.f32 %v572_v41, %v573_v59 }
 0x17e   :  { %v498_v23 = vadd.f32 %v497_v7, %v496_v55  ;;  %v541_v24 = vmax.f32 %v539_v56, %v540_v8  ;;  %v516_v46 = vmul.f32 %v1349_v63, %v465_v29  ;;  %v536_v55 = vmax.f32 %v534_v20, %v535_v38 }
 0x17f   :  { %v474_v42 = vrot.slane %v473_v33, 4  ;;  %v545_v43 = vrot.slane %v544_v34, 4  ;;  %v504_v11 = vrot.slane %v503_v58, 2  ;;  %v575_v31 = vrot.slane %v574_v12, 2 }
 0x180   :  { %v416_v44 = vpop.f32.mrf.mxu1  ;;  %v499_v41 = vrot.slane %v498_v23, 1  ;;  %v570_v56 = vrot.slane %v569_v39, 1  ;;  %v579_v8 = vadd.f32 %v1351_v6, %v515_v36  ;;  %782 = vmatpush.bf16.msrb.mxu3 %v1024_v62 }
 0x181   :  { %v475_v52 = vadd.f32 %v474_v42, %v473_v33  ;;  %v546_v61 = vmax.f32 %v544_v34, %v545_v43  ;;  %v417_v9 = vadd.f32 %v1324_v26, %v416_v44  ;;  %v505_v30 = vadd.f32 %v504_v11, %v503_v58 }
 0x182   :  { %v562_v33 = vmax.f32 %v560_v0, %v561_v15  ;;  %v472_v34 = vadd.f32 %v471_v16, %v470_v1  ;;  %v542_v42 = vrot.slane %v541_v24, 1  ;;  %v576_v48 = vmax.f32 %v574_v12, %v575_v31  ;;  %v1023_v16 = vld [vmem:[#allocation10 + $0x18] sm:$0xff] }
 0x183   :  { %v476_v60 = vrot.slane %v475_v52, 2  ;;  %v547_v13 = vrot.slane %v546_v61, 2  ;;  %v444_v27 = vmax.f32 %v417_v9, 0.0  ;;  %v506_v47 = vrot.slane %v505_v30, 1 }
 0x184   :  { %v563_v50 = vrot.slane %v562_v33, 1  ;;  %v517_v51 = vmul.f32 %v1349_v63, %v472_v34  ;;  %v500_v58 = vadd.f32 %v499_v41, %v498_v23  ;;  %v543_v59 = vmax.f32 %v541_v24, %v542_v42  ;;  %783 = vmatpush.bf16.msrb.mxu3 %v1023_v16 }
 0x185   :  { %v477_v5 = vadd.f32 %v476_v60, %v475_v52  ;;  %v548_v32 = vmax.f32 %v546_v61, %v547_v13  ;;  %v580_v0 = vadd.f32 %v536_v55, %v516_v46  ;;  %v507_v1 = vadd.f32 %v506_v47, %v505_v30 }
 0x186   :  { %v577_v2 = vrot.slane %v576_v48, 1  ;;  %v581_v4 = vadd.f32 %v543_v59, %v517_v51  ;;  %v564_v10 = vmax.f32 %v562_v33, %v563_v50  ;;  %v521_v12 = vmul.f32 %v1349_v63, %v500_v58  ;;  %v1020_v50 = vld [vmem:[#allocation10] sm:$0xff] }
 0x187   :  { %v478_v22 = vrot.slane %v477_v5, 1  ;;  %v549_v49 = vrot.slane %v548_v32, 1  ;;  %v571_v13 = vmax.f32 %v569_v39, %v570_v56  ;;  %v522_v18 = vmul.f32 %v1349_v63, %v507_v1  ;;  %v1056_v51 = vld [vmem:[%s1382_s6] ss:$0 sm:$0xff]  ;;  %s1247_s6 = smov [#allocation11]  }
 0x188   :  { %v418_v14 = vpop.f32.mrf.mxu1  ;;  %v589_v20 = vpack.c.bf16 %v581_v4, %v581_v4  ;;  %s798_s26 = sshll.u32 %s1247_s6, 4  ;;  %s799_s26 = int_to_ptr.vmem [resolvable:$true] %s798_s26 }
 0x189   :  { %v419_v17 = vadd.f32 %v1324_v26, %v418_v14  ;;  %v492_v26 = vrot.slane %v491_v19, 1  ;;  %v479_v40 = vadd.f32 %v478_v22, %v477_v5  ;;  %v550_v3 = vmax.f32 %v548_v32, %v549_v49 }
 0x18a   :  { %v587_v22 = vpack.c.bf16 %v579_v8, %v579_v8  ;;  %v585_v36 = vadd.f32 %v571_v13, %v521_v12  ;;  %v625_v30 = vunpack.c.l.b16 %v589_v20 }
 0x18b   :  { %v445_v25 = vmax.f32 %v419_v17, 0.0  ;;  %v493_v54 = vadd.f32 %v492_v26, %v491_v19  ;;  %v518_v57 = vmul.f32 %v1349_v63, %v479_v40  ;;  %v588_v17 = vpack.c.bf16 %v580_v0, %v580_v0  ;;  %v1021_v26 = vld [vmem:[#allocation10 + $0x8] sm:$0xff] }
 0x18c   :  { %v578_v19 = vmax.f32 %v576_v48, %v577_v2  ;;  %v623_v32 = vunpack.c.l.b16 %v587_v22 }
 0x18d   :  { %v480_v35 = vadd.f32 %v445_v25, %v444_v27  ;;  %v551_v37 = vmax.f32 %v444_v27, %v445_v25  ;;  %v520_v9 = vmul.f32 %v1349_v63, %v493_v54  ;;  %v582_v11 = vadd.f32 %v550_v3, %v518_v57  ;;  %v1022_v25 = vld [vmem:[#allocation10 + $0x10] sm:$0xff]  ;;  %v1057_v57 = vld [vmem:[%s1384_s8] ss:$0 sm:$0xff] }
 0x18e   :  { %v624_v28 = vunpack.c.l.b16 %v588_v17  ;;  %v586_v29 = vadd.f32 %v578_v19, %v522_v18  ;;  %784 = vmatpush.bf16.msrb.mxu3 %v1022_v25 }
 0x18f   :  { %v481_v43 = vrot.slane %v480_v35, 4  ;;  %v552_v44 = vrot.slane %v551_v37, 4  ;;  %v584_v23 = vadd.f32 %v564_v10, %v520_v9  ;;  %v590_v6 = vpack.c.bf16 %v582_v11, %v582_v11 }
 0x190   :  { %v632_v38 = vsel %vm631_vm1, %v624_v28, %v623_v32  ;;  %v594_v39 = vpack.c.bf16 %v586_v29, %v586_v29 }
 0x191   :  { %v482_v52 = vadd.f32 %v481_v43, %v480_v35  ;;  %v553_v53 = vmax.f32 %v551_v37, %v552_v44  ;;  %v592_v33 = vpack.c.bf16 %v584_v23, %v584_v23  ;;  %v626_v34 = vunpack.c.l.b16 %v590_v6 }
 0x192   :  { %v593_v37 = vpack.c.bf16 %v585_v36, %v585_v36  ;;  %v634_v40 = vsel %vm633_vm2, %v625_v30, %v632_v38  ;;  %785 = vmatpush.bf16.msrb.mxu3 %v1021_v26  ;;  %v630_v45 = vunpack.c.l.b16 %v594_v39 }
 0x193   :  { %v483_v60 = vrot.slane %v482_v52, 2  ;;  %v554_v61 = vrot.slane %v553_v53, 2  ;;  %v628_v41 = vunpack.c.l.b16 %v592_v33  ;;  %v636_v42 = vsel %vm635_vm3, %v626_v34, %v634_v40 }
 0x194   :  { %v629_v43 = vunpack.c.l.b16 %v593_v37 }
 0x195   :  { %v484_v5 = vadd.f32 %v483_v60, %v482_v52  ;;  %v555_v7 = vmax.f32 %v553_v53, %v554_v61 }
 0x196   :  { %786 = vmatpush.bf16.msrb.mxu3 %v1020_v50 }
 0x197   :  { %v485_v14 = vrot.slane %v484_v5, 1  ;;  %v556_v15 = vrot.slane %v555_v7, 1 }
 0x199   :  { %v486_v21 = vadd.f32 %v485_v14, %v484_v5  ;;  %v557_v27 = vmax.f32 %v555_v7, %v556_v15 }
 0x19b   :  { %v519_v24 = vmul.f32 %v1349_v63, %v486_v21 }
 0x19d   :  { %v583_v31 = vadd.f32 %v557_v27, %v519_v24 }
 0x19f   :  { %v591_v35 = vpack.c.bf16 %v583_v31, %v583_v31 }
 0x1a1   :  { %v627_v63 = vunpack.c.l.b16 %v591_v35 }
 0x1a3   :  { %v638_v44 = vsel %vm637_vm4, %v627_v63, %v636_v42 }
 0x1a4   :  { %v640_v46 = vsel %vm639_vm5, %v628_v41, %v638_v44 }
 0x1a5   :  { %v642_v47 = vsel %vm641_vm6, %v629_v43, %v640_v46 }
 0x1a6   :  { %v644_v48 = vsel %vm643_vm7, %v630_v45, %v642_v47 }
 0x1a7   :  { %v645_v49 = vpack.c.b16 %v644_v48, %v644_v48 }
 0x1a9   :  { %703 = vmatmul.bf16.vlgmr.msrb.gmra.mxu2 %v645_v49 }
 0x22c   :  { %v704_v52 = vpop.f32.mrf.mxu2 }
 0x22d   :  { %v705_v53 = vadd.f32 %v1056_v51, %v704_v52 }
 0x22f   :  { %v708_v54 = vmax.f32 %v705_v53, 0.0 }
 0x231   :  { %709 = vst [vmem:[#allocation12] sm:$0xff] %v708_v54  ;;  %v710_v55 = vpack.c.bf16 %v708_v54, %v708_v54 }
 0x232   :  { %814 = dma.vmem_to_hbm [thread:$0]  %s810_s20, 128, %s812_s23, [#allocation13]  }
 0x233   :  { %787 = vmatmul.bf16.vlgmr.msrb.gmra.mxu3 %v710_v55 }
 0x234   :  { %v706_v56 = vpop.f32.mrf.mxu2 }
 0x2b6   :  { %v788_v58 = vpop.f32.mrf.mxu3 }
 0x2b7   :  { %v789_v59 = vadd.f32 %v1057_v57, %v788_v58 }
 0x2b9   :  { %792 = vst [vmem:[#allocation11] sm:$0xff] %v789_v59 }
 0x2ba   :  { %803 = dma.vmem_to_hbm [thread:$0]  %s799_s26, 128, %s801_s28, [#allocation4]  }
 0x2be   :  { %v790_v60 = vpop.f32.mrf.mxu3 }
 0x2bf   :  { %1234 = dma.done.wait [#allocation4], 128  }
 0x2c0   :  { %1235 = vsyncadd [#allocation4], 4294967168 }
 0x2c1   :  { %1236 = dma.done.wait [#allocation13], 128  }
 0x2c2   :  { %1237 = vsyncadd [#allocation13], 4294967168 }
 0x2c3   :  { %823 = vsyncpa [#allocation3], 1 }
 0x2c4   :  { %824 = vsyncpa [#allocation6], 1 }
 0x2c5   :  { %825 = vsyncpa [#allocation9], 1 }
 0x2c6   :  { %826 = vsyncpa [#allocation4], 1 }
 0x2c7   :  { %827 = vsyncpa [#allocation13], 1 }

</bundles_post_ra>
